<compile_context>
chip_gen: v7x
topology: tpu7x:2x2x1
jax: 0.10.0
libtpu: 0.0.40
codegen_flags: <defaults>
</compile_context>

<pallas_src>
import jax
import jax.numpy as jnp
from jax.experimental import pallas as pl
from jax.experimental.pallas import tpu as pltpu


def _quad_kernel(x_ref, o_ref):
    # Elementwise square of the current VMEM tile (pure VPU work).
    v = x_ref[...]
    o_ref[...] = v * v


# Native sublane tile height per element size (bytes -> rows).
_MIN_SUBLANES = {4: 8, 2: 16, 1: 32}


def quad(
    x: jax.Array,
    *,
    target_block_bytes: int = 2 * 1024 * 1024,
    donate_input: bool = False,
) -> jax.Array:
    """Elementwise x*x via a Pallas TPU kernel. Accepts any shape/dtype."""
    orig_shape = x.shape
    dtype = x.dtype
    n = x.size
    if n == 0:
        return x

    itemsize = jnp.dtype(dtype).itemsize
    min_sub = _MIN_SUBLANES.get(itemsize, 8)

    # Pick the widest lane count that divides the flat size -> pure reshape,
    # no padding copy, lane-dense (unmasked) stores.
    lanes = None
    for cand in (1024, 512, 256, 128):
        if n % cand == 0:
            lanes = cand
            break

    padded = False
    if lanes is None:
        # Rare awkward sizes: minimally pad to one native (min_sub, 128) tile.
        lanes = 128
        pad_to = min_sub * lanes
        n_pad = (-n) % pad_to
        x_flat = jnp.concatenate(
            [jnp.reshape(x, (-1,)), jnp.zeros((n_pad,), dtype=dtype)]
        )
        padded = True
    else:
        x_flat = jnp.reshape(x, (-1,))

    rows = x_flat.size // lanes
    x2d = jnp.reshape(x_flat, (rows, lanes))

    # Row-tile selection: ~target_block_bytes per block, dtype-aware sublane
    # alignment, partial last block handled by the cdiv grid (no shrinking).
    if rows <= min_sub:
        tr = rows  # full-extent block is always a legal block shape
    else:
        tr = max(target_block_bytes // (lanes * itemsize), min_sub)
        tr = min(tr, rows)
        tr = (tr // min_sub) * min_sub

    grid = (pl.cdiv(rows, tr),)

    out2d = pl.pallas_call(
        _quad_kernel,
        out_shape=jax.ShapeDtypeStruct((rows, lanes), dtype),
        grid_spec=pltpu.PrefetchScalarGridSpec(
            num_scalar_prefetch=0,
            grid=grid,
            in_specs=[pl.BlockSpec((tr, lanes), lambda i: (i, 0))],
            out_specs=pl.BlockSpec((tr, lanes), lambda i: (i, 0)),
        ),
        compiler_params=pltpu.CompilerParams(
            dimension_semantics=("parallel",),
        ),
        cost_estimate=pl.CostEstimate(
            flops=n, transcendentals=0, bytes_accessed=2 * n * itemsize
        ),
        input_output_aliases=({0: 0} if donate_input else {}),
    )(x2d)

    out_flat = jnp.reshape(out2d, (-1,))
    if padded:
        out_flat = out_flat[:n]
    return jnp.reshape(out_flat, orig_shape)


if __name__ == "__main__":
    key = jax.random.PRNGKey(0)
    # NCHW input matching the PyTorch convention: batch=2, channels=4, 16x16.
    x = jax.random.normal(key, (2, 4, 16, 16), dtype=jnp.float32)

    y = jax.block_until_ready(quad(x))
    assert y.shape == x.shape and y.dtype == x.dtype
    assert jnp.allclose(y, x * x, atol=1e-6, rtol=1e-6)

    # Odd-shaped robustness check (exercises the padded fallback + cdiv grid).
    x2 = jax.random.normal(jax.random.PRNGKey(1), (3, 5, 7, 11), dtype=jnp.float32)
    y2 = jax.block_until_ready(quad(x2))
    assert jnp.allclose(y2, x2 * x2, atol=1e-6, rtol=1e-6)

    # bf16 check (dtype-aware sublane alignment).
    xb = jax.random.normal(jax.random.PRNGKey(2), (2, 4, 16, 16)).astype(jnp.bfloat16)
    yb = jax.block_until_ready(quad(xb))
    assert yb.dtype == xb.dtype
    assert jnp.allclose(yb.astype(jnp.float32), (xb * xb).astype(jnp.float32))

    print("KERNEL_OK")
</pallas_src>

<mosaic_0001>
module attributes {stable_mosaic.version = 11 : i64} {
  func.func @_quad_kernel(%arg0: i32, %arg1: memref<2x1024xf32, #tpu.memory_space<vmem>>, %arg2: memref<2x1024xf32, #tpu.memory_space<vmem>>) attributes {dimension_semantics = [#tpu.dimension_semantics<parallel>], iteration_bounds = array<i64: 1>, scalar_prefetch = 0 : i64, scratch_operands = 0 : i64, tpu.core_type = #tpu.core_type<tc>, window_params = [{transform_indices = @transform_0, window_bounds = array<i64: 2, 1024>}, {transform_indices = @transform_1, window_bounds = array<i64: 2, 1024>}]} {
    %c0 = arith.constant 0 : index
    %c0_0 = arith.constant 0 : index
    %0 = vector.load %arg1[%c0, %c0_0] : memref<2x1024xf32, #tpu.memory_space<vmem>>, vector<2x1024xf32>
    %1 = arith.mulf %0, %0 : vector<2x1024xf32>
    %c0_1 = arith.constant 0 : index
    %c0_2 = arith.constant 0 : index
    %2 = vector.load %arg2[%c0_1, %c0_2] : memref<2x1024xf32, #tpu.memory_space<vmem>>, vector<2x1024xf32>
    tpu.vector_store %arg2[%c0_1, %c0_2], %1 {strides = array<i32>} : memref<2x1024xf32, #tpu.memory_space<vmem>>, vector<2x1024xf32>,
    return
  }
  func.func @transform_0(%arg0: i32) -> (i32, i32) {
    %c0_i32 = arith.constant 0 : i32
    %c0_i32_0 = arith.constant 0 : i32
    return %arg0, %c0_i32 : i32, i32
  }
  func.func @transform_1(%arg0: i32) -> (i32, i32) {
    %c0_i32 = arith.constant 0 : i32
    %c0_i32_0 = arith.constant 0 : i32
    return %arg0, %c0_i32 : i32, i32
  }
}

</mosaic_0001>

<bundles_post_ra>
// kernel: tpu_custom_call.1
= control target key start
LH: loop header
LB: loop body
LE: loop exit
PB: predicated region body
PF: predicated region fallthrough
CT: control target
= control target key end

     0   :  { %6 = vsyncpa [#allocation3], 0  ;;  %s128_s0 = inlined_call_operand.hbm [shape: f32[2,1024], index: 0, kind: input, shape index: {}]   ;;  %s129_s1 = inlined_call_operand.hbm [shape: f32[2,1024], index: 1, kind: output, shape index: {}]  }
   0x1   :  { %7 = vsyncpa [#allocation4], 0  ;;  %s92_s6 = smov [#allocation2]   ;;  %s44_s10 = scalar_lea.hbm %s128_s0, 256 }
   0x2   :  { %s14_s7 = sshll.u32 %s92_s6, 4  ;;  %p45_p0 = scmp.ne.s32.totalorder %s128_s0, %s44_s10  ;;  %s15_s7 = int_to_ptr.vmem [resolvable:$true] %s14_s7 }
   0x3   :  { %p48_p1 = scmp.lt.u32.totalorder %s44_s10, %s128_s0 }
   0x5   :  { %p50_p2 = pnand %p48_p1, %p45_p0 }
   0x7   :  { %53 = shalt.err (!%p50_p2)
}
   0x8   :  { %s54_s15 = scalar_lea.vmem %s15_s7, 256  ;;  %p59_p4 = scmp.lt.s32.totalorder %s15_s7, %s15_s7 }
   0x9   :  { %p55_p3 = scmp.ne.s32.totalorder %s15_s7, %s54_s15  ;;  %p60_p5 = scmp.lt.s32.totalorder %s54_s15, %s54_s15 }
   0xb   :  { %p61_p6 = por %p60_p5, %p59_p4 }
   0xd   :  { %p62_p7 = pnand %p61_p6, %p55_p3 }
   0xf   :  { %65 = shalt.err (!%p62_p7)
}
  0x10   :  { %17 = dma.hbm_to_vmem [thread:$0]  %s128_s0, 256, %s15_s7, [#allocation3]  }
  0x11   :  { %88 = dma.done.wait [#allocation3], 256  }
  0x12   :  { %89 = vsyncadd [#allocation3], 4294967040  ;;  %s93_s18 = smov [#allocation5]   ;;  %v21_v0 = vld [vmem:[#allocation2] sm:$0xff]  ;;  %v22_v1 = vld [vmem:[#allocation2 + $0x8] sm:$0xff] }
  0x13   :  { %s33_s19 = sshll.u32 %s93_s18, 4  ;;  %v23_v2 = vmul.f32 %v21_v0, %v21_v0  ;;  %v24_v3 = vmul.f32 %v22_v1, %v22_v1  ;;  %s34_s19 = int_to_ptr.vmem [resolvable:$true] %s33_s19 }
  0x14   :  { %s66_s20 = scalar_lea.vmem %s34_s19, 256  ;;  %p71_p9 = scmp.lt.s32.totalorder %s34_s19, %s34_s19 }
  0x15   :  { %25 = vst [vmem:[#allocation5] sm:$0xff] %v23_v2  ;;  %26 = vst [vmem:[#allocation5 + $0x8] sm:$0xff] %v24_v3  ;;  %p67_p8 = scmp.ne.s32.totalorder %s34_s19, %s66_s20  ;;  %p72_p10 = scmp.lt.s32.totalorder %s66_s20, %s66_s20 }
  0x17   :  { %p73_p11 = por %p72_p10, %p71_p9 }
  0x19   :  { %p74_p12 = pnand %p73_p11, %p67_p8 }
  0x1b   :  { %77 = shalt.err (!%p74_p12)
}
  0x1c   :  { %s78_s22 = scalar_lea.hbm %s129_s1, 256 }
  0x1d   :  { %p79_p13 = scmp.ne.s32.totalorder %s129_s1, %s78_s22  ;;  %p82_p0 = scmp.lt.u32.totalorder %s78_s22, %s129_s1 }
  0x1f   :  { %p84_p1 = pnand %p82_p0, %p79_p13 }
  0x21   :  { %87 = shalt.err (!%p84_p1)
}
  0x22   :  { %36 = dma.vmem_to_hbm [thread:$0]  %s34_s19, 256, %s129_s1, [#allocation4]  }
  0x23   :  { %90 = dma.done.wait [#allocation4], 256  }
  0x24   :  { %91 = vsyncadd [#allocation4], 4294967040 }
  0x25   :  { %40 = vsyncpa [#allocation3], 1 }
  0x26   :  { %41 = vsyncpa [#allocation4], 1 }

</bundles_post_ra>
